<compile_context>
chip_gen: v5e
topology: v5e:2x2
jax: 0.10.0
libtpu: 0.0.40
codegen_flags: <defaults>
</compile_context>

<pallas_src>
import jax
import jax.numpy as jnp
from jax.experimental import pallas as pl
from jax.experimental.pallas import tpu as pltpu

IN_DIM = 28 * 28  # 784


def _round_up(n, m):
    return ((n + m - 1) // m) * m


def mlp_kernel(x_ref, w1_ref, b1_ref, w2_ref, b2_ref, w3_ref, b3_ref, o_ref):
    # x arrives as f32 straight from HBM (no separate convert pass); cast to
    # bf16 in-kernel right before the MXU.  Weights are bf16 (in, out), lane-
    # padded to 128; biases are f32 (1, 128).  Elementwise math stays f32.
    x = x_ref[...].astype(jnp.bfloat16)
    h1 = jnp.dot(x, w1_ref[...], preferred_element_type=jnp.float32) + b1_ref[...]
    h1 = jnp.maximum(h1, 0.0)                                   # ReLU (f32)
    h2 = jnp.dot(h1.astype(jnp.bfloat16), w2_ref[...],
                 preferred_element_type=jnp.float32) + b2_ref[...]
    h2 = jnp.maximum(h2, 0.0)                                   # ReLU (f32)
    logits = jnp.dot(h2.astype(jnp.bfloat16), w3_ref[...],
                     preferred_element_type=jnp.float32) + b3_ref[...]
    o_ref[...] = logits.astype(o_ref.dtype)                     # bf16 store


def prepare_params(params):
    """One-time prep (outside the hot path): transpose PyTorch-layout (out,in)
    weights to (in,out), zero-pad the output (lane) dims to multiples of 128,
    cast weights to bf16, keep biases f32.  Padded weight columns / bias lanes
    are zero, so padded activation lanes stay exactly 0 through ReLU."""
    w1, b1, w2, b2, w3, b3 = params

    def prep(w, b, in_pad, out_pad):
        out_f, in_f = w.shape
        wt = jnp.zeros((in_pad, out_pad), jnp.float32).at[:in_f, :out_f].set(w.T)
        bp = jnp.zeros((1, out_pad), jnp.float32).at[:, :out_f].set(b)
        return wt.astype(jnp.bfloat16), bp

    h1p = _round_up(w1.shape[0], 128)
    h2p = _round_up(w2.shape[0], 128)
    outp = _round_up(w3.shape[0], 128)
    w1t, b1p = prep(w1, b1, IN_DIM, h1p)
    w2t, b2p = prep(w2, b2, h1p, h2p)
    w3t, b3p = prep(w3, b3, h2p, outp)
    return (w1t, b1p, w2t, b2p, w3t, b3p), w3.shape[0]


def mlp_forward(img, prepared, out_dim=10):
    """img: (B, 1, 28, 28) f32 (NCHW). prepared: output of prepare_params.
    Returns (B, out_dim) f32 logits."""
    w1t, b1, w2t, b2, w3t, b3 = prepared
    B = img.shape[0]
    h1p, h2p, outp = w1t.shape[1], w2t.shape[1], w3t.shape[1]

    # Free reshape (contiguous bitcast); stays f32 — cast happens inside kernel.
    x = img.reshape(B, IN_DIM)

    # Batch tile:
    #  * B >= 512: tiles of 256..1024 rows (multiple of 256 for MXU M-fill),
    #    sized so the grid has >= 2 steps -> both v7x TensorCores get work.
    #  * smaller B: one tile rounded up to 16 rows (bf16 sublane packing).
    if B >= 512:
        TB = min(1024, _round_up(B, 512) // 2)
    else:
        TB = _round_up(max(B, 16), 16)
    grid = (pl.cdiv(B, TB),)
    # No jnp.pad copy: Pallas handles the ragged last block; each output row
    # depends only on its own input row, so padded rows are simply discarded.

    flops = 2 * B * (IN_DIM * h1p + h1p * h2p + h2p * outp)
    bytes_accessed = (B * IN_DIM * 4 + B * outp * 2
                      + (w1t.size + w2t.size + w3t.size) * 2
                      + (b1.size + b2.size + b3.size) * 4)

    const = lambda shape: pl.BlockSpec(shape, lambda i: (0, 0))  # VMEM-resident
    out = pl.pallas_call(
        mlp_kernel,
        out_shape=jax.ShapeDtypeStruct((B, outp), jnp.bfloat16),
        grid=grid,
        in_specs=[
            pl.BlockSpec((TB, IN_DIM), lambda i: (i, 0)),        # f32 activations
            const((IN_DIM, h1p)), const((1, h1p)),
            const((h1p, h2p)),    const((1, h2p)),
            const((h2p, outp)),   const((1, outp)),
        ],
        out_specs=pl.BlockSpec((TB, outp), lambda i: (i, 0)),
        compiler_params=pltpu.CompilerParams(
            dimension_semantics=("parallel",)),                  # both TCs on v7x
        cost_estimate=pl.CostEstimate(flops=flops, transcendentals=0,
                                      bytes_accessed=bytes_accessed),
    )(x, w1t, b1, w2t, b2, w3t, b3)

    # Tiny slice + cast back to f32 logits (matches the PyTorch module output).
    return out[:, :out_dim].astype(jnp.float32)


def init_params(key, hidden_size_1=100, hidden_size_2=100):
    """Deterministic init mimicking nn.Linear default (uniform +-1/sqrt(fan_in)),
    stored in PyTorch layout: W is (out, in)."""
    ks = jax.random.split(key, 6)

    def linear(kw, kb, fan_out, fan_in):
        bound = 1.0 / jnp.sqrt(fan_in)
        w = jax.random.uniform(kw, (fan_out, fan_in), jnp.float32, -bound, bound)
        b = jax.random.uniform(kb, (fan_out,), jnp.float32, -bound, bound)
        return w, b

    w1, b1 = linear(ks[0], ks[1], hidden_size_1, IN_DIM)
    w2, b2 = linear(ks[2], ks[3], hidden_size_2, hidden_size_1)
    w3, b3 = linear(ks[4], ks[5], 10, hidden_size_2)
    return (w1, b1, w2, b2, w3, b3)


def mlp_reference(img, params):
    """Pure-JAX f32 reference matching the PyTorch module."""
    w1, b1, w2, b2, w3, b3 = params
    x = img.reshape(img.shape[0], -1)
    x = jnp.maximum(x @ w1.T + b1, 0.0)
    x = jnp.maximum(x @ w2.T + b2, 0.0)
    return x @ w3.T + b3


if __name__ == "__main__":
    key = jax.random.PRNGKey(0)
    k_img, k_par = jax.random.split(key)
    img = jax.random.normal(k_img, (16, 1, 28, 28), jnp.float32)  # small MNIST-like batch
    params = init_params(k_par)

    # One-time param prep (transpose + pad + bf16 cast) — NOT in the per-call path.
    prepared, out_dim = prepare_params(params)

    out = jax.jit(mlp_forward, static_argnums=2)(img, prepared, out_dim)
    out = jax.block_until_ready(out)

    ref = mlp_reference(img, params)
    assert out.shape == (16, 10)
    # bf16 inputs/weights/output with f32 accumulation -> small tolerance vs f32 ref.
    assert jnp.allclose(out, ref, atol=5e-2, rtol=5e-2), "mismatch vs reference"
    print("KERNEL_OK")
</pallas_src>

<mosaic_0001>
module attributes {stable_mosaic.version = 11 : i64} {
  func.func @mlp_kernel(%arg0: i32, %arg1: memref<16x784xf32, #tpu.memory_space<vmem>>, %arg2: memref<784x128xbf16, #tpu.memory_space<vmem>>, %arg3: memref<1x128xf32, #tpu.memory_space<vmem>>, %arg4: memref<128x128xbf16, #tpu.memory_space<vmem>>, %arg5: memref<1x128xf32, #tpu.memory_space<vmem>>, %arg6: memref<128x128xbf16, #tpu.memory_space<vmem>>, %arg7: memref<1x128xf32, #tpu.memory_space<vmem>>, %arg8: memref<16x128xbf16, #tpu.memory_space<vmem>>) attributes {dimension_semantics = [#tpu.dimension_semantics<parallel>], iteration_bounds = array<i64: 1>, scalar_prefetch = 0 : i64, scratch_operands = 0 : i64, tpu.core_type = #tpu.core_type<tc>, window_params = [{transform_indices = @transform_0, window_bounds = array<i64: 16, 784>}, {pipeline_mode = #tpu.pipeline_mode<synchronous>, transform_indices = @transform_1, window_bounds = array<i64: 784, 128>}, {pipeline_mode = #tpu.pipeline_mode<synchronous>, transform_indices = @transform_2, window_bounds = array<i64: 1, 128>}, {pipeline_mode = #tpu.pipeline_mode<synchronous>, transform_indices = @transform_3, window_bounds = array<i64: 128, 128>}, {pipeline_mode = #tpu.pipeline_mode<synchronous>, transform_indices = @transform_4, window_bounds = array<i64: 1, 128>}, {pipeline_mode = #tpu.pipeline_mode<synchronous>, transform_indices = @transform_5, window_bounds = array<i64: 128, 128>}, {pipeline_mode = #tpu.pipeline_mode<synchronous>, transform_indices = @transform_6, window_bounds = array<i64: 1, 128>}, {transform_indices = @transform_7, window_bounds = array<i64: 16, 128>}]} {
    %c0 = arith.constant 0 : index
    %c0_0 = arith.constant 0 : index
    %0 = vector.load %arg1[%c0, %c0_0] : memref<16x784xf32, #tpu.memory_space<vmem>>, vector<16x784xf32>
    %1 = arith.truncf %0 : vector<16x784xf32> to vector<16x784xbf16>
    %c0_1 = arith.constant 0 : index
    %c0_2 = arith.constant 0 : index
    %2 = vector.load %arg2[%c0_1, %c0_2] : memref<784x128xbf16, #tpu.memory_space<vmem>>, vector<784x128xbf16>
    %cst = arith.constant dense<0.000000e+00> : vector<16x128xf32>
    %3 = tpu.matmul %1, %2, %cst {dimension_numbers = #tpu.dot_dimension_numbers<[1], [0], [0], [1], [0, 0, 1, 1], [], []>} : vector<16x784xbf16>, vector<784x128xbf16>, vector<16x128xf32> -> vector<16x128xf32>
    %c0_3 = arith.constant 0 : index
    %c0_4 = arith.constant 0 : index
    %4 = vector.load %arg3[%c0_3, %c0_4] : memref<1x128xf32, #tpu.memory_space<vmem>>, vector<1x128xf32>
    %5 = vector.broadcast %4 : vector<1x128xf32> to vector<16x128xf32>
    %6 = arith.addf %3, %5 : vector<16x128xf32>
    %cst_5 = arith.constant 0.000000e+00 : f32
    %7 = vector.broadcast %cst_5 : f32 to vector<16x128xf32>
    %8 = arith.maximumf %6, %7 : vector<16x128xf32>
    %9 = arith.truncf %8 : vector<16x128xf32> to vector<16x128xbf16>
    %c0_6 = arith.constant 0 : index
    %c0_7 = arith.constant 0 : index
    %10 = vector.load %arg4[%c0_6, %c0_7] : memref<128x128xbf16, #tpu.memory_space<vmem>>, vector<128x128xbf16>
    %cst_8 = arith.constant dense<0.000000e+00> : vector<16x128xf32>
    %11 = tpu.matmul %9, %10, %cst_8 {dimension_numbers = #tpu.dot_dimension_numbers<[1], [0], [0], [1], [0, 0, 1, 1], [], []>} : vector<16x128xbf16>, vector<128x128xbf16>, vector<16x128xf32> -> vector<16x128xf32>
    %c0_9 = arith.constant 0 : index
    %c0_10 = arith.constant 0 : index
    %12 = vector.load %arg5[%c0_9, %c0_10] : memref<1x128xf32, #tpu.memory_space<vmem>>, vector<1x128xf32>
    %13 = vector.broadcast %12 : vector<1x128xf32> to vector<16x128xf32>
    %14 = arith.addf %11, %13 : vector<16x128xf32>
    %cst_11 = arith.constant 0.000000e+00 : f32
    %15 = vector.broadcast %cst_11 : f32 to vector<16x128xf32>
    %16 = arith.maximumf %14, %15 : vector<16x128xf32>
    %17 = arith.truncf %16 : vector<16x128xf32> to vector<16x128xbf16>
    %c0_12 = arith.constant 0 : index
    %c0_13 = arith.constant 0 : index
    %18 = vector.load %arg6[%c0_12, %c0_13] : memref<128x128xbf16, #tpu.memory_space<vmem>>, vector<128x128xbf16>
    %cst_14 = arith.constant dense<0.000000e+00> : vector<16x128xf32>
    %19 = tpu.matmul %17, %18, %cst_14 {dimension_numbers = #tpu.dot_dimension_numbers<[1], [0], [0], [1], [0, 0, 1, 1], [], []>} : vector<16x128xbf16>, vector<128x128xbf16>, vector<16x128xf32> -> vector<16x128xf32>
    %c0_15 = arith.constant 0 : index
    %c0_16 = arith.constant 0 : index
    %20 = vector.load %arg7[%c0_15, %c0_16] : memref<1x128xf32, #tpu.memory_space<vmem>>, vector<1x128xf32>
    %21 = vector.broadcast %20 : vector<1x128xf32> to vector<16x128xf32>
    %22 = arith.addf %19, %21 : vector<16x128xf32>
    %23 = arith.truncf %22 : vector<16x128xf32> to vector<16x128xbf16>
    %c0_17 = arith.constant 0 : index
    %c0_18 = arith.constant 0 : index
    %24 = vector.load %arg8[%c0_17, %c0_18] : memref<16x128xbf16, #tpu.memory_space<vmem>>, vector<16x128xbf16>
    tpu.vector_store %arg8[%c0_17, %c0_18], %23 {strides = array<i32>} : memref<16x128xbf16, #tpu.memory_space<vmem>>, vector<16x128xbf16>,
    return
  }
  func.func @transform_0(%arg0: i32) -> (i32, i32) {
    %c0_i32 = arith.constant 0 : i32
    %c0_i32_0 = arith.constant 0 : i32
    return %arg0, %c0_i32 : i32, i32
  }
  func.func @transform_1(%arg0: i32) -> (i32, i32) {
    %c0_i32 = arith.constant 0 : i32
    %c0_i32_0 = arith.constant 0 : i32
    %c0_i32_1 = arith.constant 0 : i32
    return %c0_i32, %c0_i32_0 : i32, i32
  }
  func.func @transform_2(%arg0: i32) -> (i32, i32) {
    %c0_i32 = arith.constant 0 : i32
    %c0_i32_0 = arith.constant 0 : i32
    %c0_i32_1 = arith.constant 0 : i32
    return %c0_i32, %c0_i32_0 : i32, i32
  }
  func.func @transform_3(%arg0: i32) -> (i32, i32) {
    %c0_i32 = arith.constant 0 : i32
    %c0_i32_0 = arith.constant 0 : i32
    %c0_i32_1 = arith.constant 0 : i32
    return %c0_i32, %c0_i32_0 : i32, i32
  }
  func.func @transform_4(%arg0: i32) -> (i32, i32) {
    %c0_i32 = arith.constant 0 : i32
    %c0_i32_0 = arith.constant 0 : i32
    %c0_i32_1 = arith.constant 0 : i32
    return %c0_i32, %c0_i32_0 : i32, i32
  }
  func.func @transform_5(%arg0: i32) -> (i32, i32) {
    %c0_i32 = arith.constant 0 : i32
    %c0_i32_0 = arith.constant 0 : i32
    %c0_i32_1 = arith.constant 0 : i32
    return %c0_i32, %c0_i32_0 : i32, i32
  }
  func.func @transform_6(%arg0: i32) -> (i32, i32) {
    %c0_i32 = arith.constant 0 : i32
    %c0_i32_0 = arith.constant 0 : i32
    %c0_i32_1 = arith.constant 0 : i32
    return %c0_i32, %c0_i32_0 : i32, i32
  }
  func.func @transform_7(%arg0: i32) -> (i32, i32) {
    %c0_i32 = arith.constant 0 : i32
    %c0_i32_0 = arith.constant 0 : i32
    return %arg0, %c0_i32 : i32, i32
  }
}

</mosaic_0001>

<bundles_post_ra>
// kernel: mlp_forward.1
= control target key start
LH: loop header
LB: loop body
LE: loop exit
PB: predicated region body
PF: predicated region fallthrough
CT: control target
= control target key end

     0   :  { %vm444_vm0 = vcmask 130048   ;;  %s1347_s1 = inlined_call_operand.vmem [shape: bf16[784,128], index: 1, kind: input, shape index: {}]   ;;  %s1348_s2 = inlined_call_operand.vmem [shape: f32[1,128], index: 2, kind: input, shape index: {}]   ;;  %s1349_s0 = inlined_call_operand.vmem [shape: f32[16,784], index: 0, kind: input, shape index: {}]   ;;  %s1350_s4 = inlined_call_operand.vmem [shape: f32[1,128], index: 4, kind: input, shape index: {}]   ;;  %s1351_s3 = inlined_call_operand.vmem [shape: bf16[128,128], index: 3, kind: input, shape index: {}]   ;;  %s1352_s5 = inlined_call_operand.vmem [shape: bf16[128,128], index: 5, kind: input, shape index: {}]   ;;  %s1353_s6 = inlined_call_operand.vmem [shape: f32[1,128], index: 6, kind: input, shape index: {}]   ;;  %s1354_s7 = inlined_call_operand.vmem [shape: bf16[16,128], index: 7, kind: output, shape index: {}]  }
   0x1   :  { %v992_v0 = vld [vmem:[%s1347_s1 + $0x38] sm:$0xff]  ;;  %v991_v4 = vld [vmem:[%s1347_s1 + $0x30] sm:$0xff]  ;;  %v990_v8 = vld [vmem:[%s1347_s1 + $0x28] sm:$0xff] }
   0x2   :  { %v1000_v1 = vld [vmem:[%s1347_s1 + $0x78] sm:$0xff]  ;;  %448 = vmatpush.bf16.msra.mxu0 %v992_v0  ;;  %v999_v5 = vld [vmem:[%s1347_s1 + $0x70] sm:$0xff]  ;;  %v998_v9 = vld [vmem:[%s1347_s1 + $0x68] sm:$0xff] }
   0x3   :  { %v1008_v2 = vld [vmem:[%s1347_s1 + $0xb8] sm:$0xff]  ;;  %462 = vmatpush.bf16.msra.mxu1 %v1000_v1  ;;  %v1007_v6 = vld [vmem:[%s1347_s1 + $0xb0] sm:$0xff]  ;;  %v1006_v10 = vld [vmem:[%s1347_s1 + $0xa8] sm:$0xff] }
   0x4   :  { %v1016_v3 = vld [vmem:[%s1347_s1 + $0xf8] sm:$0xff]  ;;  %476 = vmatpush.bf16.msra.mxu2 %v1008_v2  ;;  %v1015_v7 = vld [vmem:[%s1347_s1 + $0xf0] sm:$0xff]  ;;  %v1014_v11 = vld [vmem:[%s1347_s1 + $0xe8] sm:$0xff] }
   0x5   :  { %490 = vmatpush.bf16.msra.mxu3 %v1016_v3  ;;  %v989_v12 = vld [vmem:[%s1347_s1 + $0x20] sm:$0xff]  ;;  %v988_v16 = vld [vmem:[%s1347_s1 + $0x18] sm:$0xff]  ;;  %v987_v20 = vld [vmem:[%s1347_s1 + $0x10] sm:$0xff] }
   0x6   :  { %449 = vmatpush.bf16.msra.mxu0 %v991_v4  ;;  %v997_v13 = vld [vmem:[%s1347_s1 + $0x60] sm:$0xff]  ;;  %v996_v17 = vld [vmem:[%s1347_s1 + $0x58] sm:$0xff]  ;;  %v995_v21 = vld [vmem:[%s1347_s1 + $0x50] sm:$0xff] }
   0x7   :  { %463 = vmatpush.bf16.msra.mxu1 %v999_v5  ;;  %v1005_v14 = vld [vmem:[%s1347_s1 + $0xa0] sm:$0xff]  ;;  %v1004_v18 = vld [vmem:[%s1347_s1 + $0x98] sm:$0xff]  ;;  %v1003_v22 = vld [vmem:[%s1347_s1 + $0x90] sm:$0xff] }
   0x8   :  { %477 = vmatpush.bf16.msra.mxu2 %v1007_v6  ;;  %v1013_v15 = vld [vmem:[%s1347_s1 + $0xe0] sm:$0xff]  ;;  %v1012_v19 = vld [vmem:[%s1347_s1 + $0xd8] sm:$0xff]  ;;  %v1011_v23 = vld [vmem:[%s1347_s1 + $0xd0] sm:$0xff] }
   0x9   :  { %491 = vmatpush.bf16.msra.mxu3 %v1015_v7  ;;  %v986_v24 = vld [vmem:[%s1347_s1 + $0x8] sm:$0xff]  ;;  %v985_v28 = vld [vmem:[%s1347_s1] sm:$0xff]  ;;  %v34_v31 = vld [vmem:[%s1349_s0 + $0x38] sm:$0xff] }
   0xa   :  { %450 = vmatpush.bf16.msra.mxu0 %v990_v8  ;;  %v994_v25 = vld [vmem:[%s1347_s1 + $0x48] sm:$0xff]  ;;  %v993_v29 = vld [vmem:[%s1347_s1 + $0x40] sm:$0xff]  ;;  %v1024_v34 = vld [vmem:[%s1347_s1 + $0x138] sm:$0xff] }
   0xb   :  { %464 = vmatpush.bf16.msra.mxu1 %v998_v9  ;;  %v1002_v26 = vld [vmem:[%s1347_s1 + $0x88] sm:$0xff]  ;;  %v27_v30 = vld [vmem:[%s1349_s0] sm:$0xff]  ;;  %v1032_v35 = vld [vmem:[%s1347_s1 + $0x178] sm:$0xff] }
   0xc   :  { %478 = vmatpush.bf16.msra.mxu2 %v1006_v10  ;;  %v1010_v27 = vld [vmem:[%s1347_s1 + $0xc8] sm:$0xff]  ;;  %v35_v33 = vld [vmem:[%s1349_s0 + $0x40] sm:$0xff]  ;;  %v29_v38 = vld [vmem:[%s1349_s0 + $0x10] sm:$0xff]  ;;  %v41_v40 = vpack.c.bf16 %v34_v31, %v27_v30 }
   0xd   :  { %492 = vmatpush.bf16.msra.mxu3 %v1014_v11  ;;  %v28_v32 = vld [vmem:[%s1349_s0 + $0x8] sm:$0xff]  ;;  %v1001_v36 = vld [vmem:[%s1347_s1 + $0x80] sm:$0xff]  ;;  %v30_v41 = vld [vmem:[%s1349_s0 + $0x18] sm:$0xff] }
   0xe   :  { %451 = vmatpush.bf16.msra.mxu0 %v989_v12  ;;  %v1009_v37 = vld [vmem:[%s1347_s1 + $0xc0] sm:$0xff]  ;;  %v36_v39 = vld [vmem:[%s1349_s0 + $0x48] sm:$0xff]  ;;  %v37_v42 = vld [vmem:[%s1349_s0 + $0x50] sm:$0xff]  ;;  %v42_v43 = vpack.c.bf16 %v35_v33, %v28_v32 }
   0xf   :  { %465 = vmatpush.bf16.msra.mxu1 %v997_v13  ;;  %v1033_v44 = vld [vmem:[%s1347_s1 + $0x180] sm:$0xff]  ;;  %v1023_v45 = vld [vmem:[%s1347_s1 + $0x130] sm:$0xff]  ;;  %v43_v47 = vpack.c.bf16 %v36_v39, %v29_v38  ;;  %v44_v48 = vpack.c.bf16 %v37_v42, %v30_v41  ;;  %v1022_v49 = vld [vmem:[%s1347_s1 + $0x128] sm:$0xff] }
  0x10   :  { %479 = vmatpush.bf16.msra.mxu2 %v1005_v14  ;;  %v1031_v46 = vld [vmem:[%s1347_s1 + $0x170] sm:$0xff]  ;;  %v1030_v50 = vld [vmem:[%s1347_s1 + $0x168] sm:$0xff]  ;;  %v1021_v51 = vld [vmem:[%s1347_s1 + $0x120] sm:$0xff] }
  0x11   :  { %493 = vmatpush.bf16.msra.mxu3 %v1013_v15  ;;  %v1029_v52 = vld [vmem:[%s1347_s1 + $0x160] sm:$0xff]  ;;  %v1020_v53 = vld [vmem:[%s1347_s1 + $0x118] sm:$0xff]  ;;  %v33_v55 = vld [vmem:[%s1349_s0 + $0x30] sm:$0xff] }
  0x12   :  { %452 = vmatpush.bf16.msra.mxu0 %v988_v16  ;;  %v1028_v54 = vld [vmem:[%s1347_s1 + $0x158] sm:$0xff]  ;;  %v40_v56 = vld [vmem:[%s1349_s0 + $0x68] sm:$0xff]  ;;  %v1019_v57 = vld [vmem:[%s1347_s1 + $0x110] sm:$0xff] }
  0x13   :  { %466 = vmatpush.bf16.msra.mxu1 %v996_v17  ;;  %v1027_v58 = vld [vmem:[%s1347_s1 + $0x150] sm:$0xff]  ;;  %v47_v59 = vpack.c.bf16 %v40_v56, %v33_v55  ;;  %v1018_v60 = vld [vmem:[%s1347_s1 + $0x108] sm:$0xff]  ;;  %v1017_v62 = vld [vmem:[%s1347_s1 + $0x100] sm:$0xff] }
  0x14   :  { %480 = vmatpush.bf16.msra.mxu2 %v1004_v18  ;;  %v1026_v61 = vld [vmem:[%s1347_s1 + $0x148] sm:$0xff]  ;;  %v1025_v63 = vld [vmem:[%s1347_s1 + $0x140] sm:$0xff]  ;;  %v38_v1 = vld [vmem:[%s1349_s0 + $0x58] sm:$0xff] }
  0x15   :  { %494 = vmatpush.bf16.msra.mxu3 %v1012_v19  ;;  %v31_v0 = vld [vmem:[%s1349_s0 + $0x20] sm:$0xff]  ;;  %v32_v2 = vld [vmem:[%s1349_s0 + $0x28] sm:$0xff]  ;;  %v1041_v6 = vld [vmem:[%s1351_s3 + $0x38] sm:$0xff] }
  0x16   :  { %453 = vmatpush.bf16.msra.mxu0 %v987_v20  ;;  %v39_v3 = vld [vmem:[%s1349_s0 + $0x60] sm:$0xff]  ;;  %v45_v4 = vpack.c.bf16 %v38_v1, %v31_v0  ;;  %v1040_v7 = vld [vmem:[%s1351_s3 + $0x30] sm:$0xff]  ;;  %v1039_v8 = vld [vmem:[%s1351_s3 + $0x28] sm:$0xff] }
  0x17   :  { %467 = vmatpush.bf16.msra.mxu1 %v995_v21  ;;  %v46_v5 = vpack.c.bf16 %v39_v3, %v32_v2  ;;  %v1038_v9 = vld [vmem:[%s1351_s3 + $0x20] sm:$0xff]  ;;  %v1037_v10 = vld [vmem:[%s1351_s3 + $0x18] sm:$0xff]  ;;  %v1036_v11 = vld [vmem:[%s1351_s3 + $0x10] sm:$0xff] }
  0x18   :  { %481 = vmatpush.bf16.msra.mxu2 %v1003_v22  ;;  %v1035_v12 = vld [vmem:[%s1351_s3 + $0x8] sm:$0xff]  ;;  %v1034_v16 = vld [vmem:[%s1351_s3] sm:$0xff]  ;;  %v1049_v18 = vld [vmem:[%s1352_s5 + $0x38] sm:$0xff] }
  0x19   :  { %495 = vmatpush.bf16.msra.mxu3 %v1011_v23  ;;  %v1055_v17 = vld [vmem:[%s1348_s2] ss:$0 sm:$0xff]  ;;  %v1048_v20 = vld [vmem:[%s1352_s5 + $0x30] sm:$0xff] }
  0x1a   :  { %454 = vmatpush.bf16.msra.mxu0 %v986_v24  ;;  %v1056_v55 = vld [vmem:[%s1350_s4] ss:$0 sm:$0xff] }
  0x1b   :  { %468 = vmatpush.bf16.msra.mxu1 %v994_v25  ;;  %v1047_v25 = vld [vmem:[%s1352_s5 + $0x28] sm:$0xff] }
  0x1c   :  { %482 = vmatpush.bf16.msra.mxu2 %v1002_v26 }
  0x1d   :  { %496 = vmatpush.bf16.msra.mxu3 %v1010_v27 }
  0x1e   :  { %455 = vmatpush.bf16.msra.mxu0 %v985_v28 }
  0x1f   :  { %469 = vmatpush.bf16.msra.mxu1 %v993_v29  ;;  %v1046_v29 = vld [vmem:[%s1352_s5 + $0x20] sm:$0xff] }
  0x20   :  { %483 = vmatpush.bf16.msra.mxu2 %v1001_v36 }
  0x21   :  { %497 = vmatpush.bf16.msra.mxu3 %v1009_v37  ;;  %456 = vmatmul.bf16.vlgmr.msra.gmra.mxu0 %v41_v40 }
  0x22   :  { %504 = vmatpush.bf16.msrb.mxu0 %v1024_v34  ;;  %470 = vmatmul.bf16.vlgmr.msra.gmra.mxu1 %v42_v43 }
  0x23   :  { %518 = vmatpush.bf16.msrb.mxu1 %v1032_v35  ;;  %484 = vmatmul.bf16.vlgmr.msra.gmra.mxu2 %v43_v47 }
  0x24   :  { %539 = vmatpush.bf16.msrb.mxu2 %v1033_v44  ;;  %498 = vmatmul.bf16.vlgmr.msra.gmra.mxu3 %v44_v48 }
  0x25   :  { %617 = vmatpush.bf16.msrb.mxu3 %v1041_v6 }
  0x26   :  { %505 = vmatpush.bf16.msrb.mxu0 %v1023_v45 }
  0x27   :  { %519 = vmatpush.bf16.msrb.mxu1 %v1031_v46 }
  0x28   :  { %702 = vmatpush.bf16.msra.mxu2 %v1049_v18 }
  0x29   :  { %618 = vmatpush.bf16.msrb.mxu3 %v1040_v7 }
  0x2a   :  { %506 = vmatpush.bf16.msrb.mxu0 %v1022_v49 }
  0x2b   :  { %520 = vmatpush.bf16.msrb.mxu1 %v1030_v50  ;;  %v1045_v50 = vld [vmem:[%s1352_s5 + $0x18] sm:$0xff] }
  0x2c   :  { %703 = vmatpush.bf16.msra.mxu2 %v1048_v20 }
  0x2d   :  { %619 = vmatpush.bf16.msrb.mxu3 %v1039_v8 }
  0x2e   :  { %507 = vmatpush.bf16.msrb.mxu0 %v1021_v51  ;;  %v1044_v51 = vld [vmem:[%s1352_s5 + $0x10] sm:$0xff] }
  0x2f   :  { %521 = vmatpush.bf16.msrb.mxu1 %v1029_v52  ;;  %v1043_v52 = vld [vmem:[%s1352_s5 + $0x8] sm:$0xff] }
  0x30   :  { %704 = vmatpush.bf16.msra.mxu2 %v1047_v25 }
  0x31   :  { %620 = vmatpush.bf16.msrb.mxu3 %v1038_v9 }
  0x32   :  { %508 = vmatpush.bf16.msrb.mxu0 %v1020_v53  ;;  %v1042_v53 = vld [vmem:[%s1352_s5] sm:$0xff] }
  0x33   :  { %522 = vmatpush.bf16.msrb.mxu1 %v1028_v54  ;;  %920 = vmatmul.msk.bf16.vlgmr.msrb.gmra.mxu2 %vm444_vm0, %v47_v59 }
  0x34   :  { %705 = vmatpush.bf16.msra.mxu2 %v1046_v29 }
  0x35   :  { %621 = vmatpush.bf16.msrb.mxu3 %v1037_v10 }
  0x36   :  { %509 = vmatpush.bf16.msrb.mxu0 %v1019_v57 }
  0x37   :  { %523 = vmatpush.bf16.msrb.mxu1 %v1027_v58 }
  0x38   :  { %706 = vmatpush.bf16.msra.mxu2 %v1045_v50 }
  0x39   :  { %622 = vmatpush.bf16.msrb.mxu3 %v1036_v11 }
  0x3a   :  { %510 = vmatpush.bf16.msrb.mxu0 %v1018_v60 }
  0x3b   :  { %524 = vmatpush.bf16.msrb.mxu1 %v1026_v61 }
  0x3c   :  { %707 = vmatpush.bf16.msra.mxu2 %v1044_v51 }
  0x3d   :  { %623 = vmatpush.bf16.msrb.mxu3 %v1035_v12 }
  0x3e   :  { %511 = vmatpush.bf16.msrb.mxu0 %v1017_v62 }
  0x3f   :  { %525 = vmatpush.bf16.msrb.mxu1 %v1025_v63  ;;  %v1057_v63 = vld [vmem:[%s1353_s6] ss:$0 sm:$0xff] }
  0x40   :  { %708 = vmatpush.bf16.msra.mxu2 %v1043_v52 }
  0x41   :  { %512 = vmatmul.bf16.vlgmr.msrb.gmra.mxu0 %v45_v4  ;;  %624 = vmatpush.bf16.msrb.mxu3 %v1034_v16 }
  0x42   :  { %526 = vmatmul.bf16.vlgmr.msrb.gmra.mxu1 %v46_v5 }
  0x44   :  { %709 = vmatpush.bf16.msra.mxu2 %v1042_v53 }
  0x9e   :  { %v457_v13 = vpop.f32.mrf.mxu0 }
  0x9f   :  { %v471_v14 = vpop.f32.mrf.mxu1  ;;  %v458_v19 = vadd.f32 %v1055_v17, %v457_v13 }
  0xa1   :  { %v472_v24 = vadd.f32 %v471_v14, %v458_v19 }
  0xa6   :  { %v485_v15 = vpop.f32.mrf.mxu2  ;;  %v459_v21 = vpop.f32.mrf.mxu0 }
  0xa7   :  { %v473_v22 = vpop.f32.mrf.mxu1  ;;  %v499_v26 = vpop.f32.mrf.mxu3  ;;  %v460_v27 = vadd.f32 %v1055_v17, %v459_v21  ;;  %v486_v28 = vadd.f32 %v485_v15, %v472_v24 }
  0xa9   :  { %v474_v30 = vadd.f32 %v473_v22, %v460_v27  ;;  %v500_v33 = vadd.f32 %v499_v26, %v486_v28 }
  0xae   :  { %v487_v23 = vpop.f32.mrf.mxu2 }
  0xaf   :  { %v488_v35 = vadd.f32 %v487_v23, %v474_v30  ;;  %v501_v37 = vpop.f32.mrf.mxu3 }
  0xb1   :  { %v502_v38 = vadd.f32 %v501_v37, %v488_v35 }
  0xb6   :  { %v541_v34 = vpop.f32.mrf.mxu2 }
  0xbe   :  { %v513_v31 = vpop.f32.mrf.mxu0  ;;  %v543_v45 = vpop.f32.mrf.mxu2 }
  0xbf   :  { %v527_v32 = vpop.f32.mrf.mxu1  ;;  %v514_v36 = vadd.f32 %v513_v31, %v500_v33 }
  0xc1   :  { %v528_v39 = vadd.f32 %v527_v32, %v514_v36 }
  0xc3   :  { %v542_v43 = vadd.f32 %v541_v34, %v528_v39 }
  0xc5   :  { %v546_v47 = vmax.f32 %v542_v43, 0.0 }
  0xc6   :  { %v515_v40 = vpop.f32.mrf.mxu0 }
  0xc7   :  { %v516_v41 = vadd.f32 %v515_v40, %v502_v38  ;;  %v529_v42 = vpop.f32.mrf.mxu1 }
  0xc9   :  { %v530_v44 = vadd.f32 %v529_v42, %v516_v41 }
  0xcb   :  { %v544_v46 = vadd.f32 %v543_v45, %v530_v44 }
  0xcd   :  { %v547_v48 = vmax.f32 %v544_v46, 0.0 }
  0xcf   :  { %v548_v49 = vpack.c.bf16 %v547_v48, %v546_v47 }
  0xd1   :  { %625 = vmatmul.bf16.vlgmr.msrb.gmra.mxu3 %v548_v49 }
 0x154   :  { %v626_v54 = vpop.f32.mrf.mxu3 }
 0x155   :  { %v627_v56 = vadd.f32 %v1056_v55, %v626_v54 }
 0x157   :  { %v631_v59 = vmax.f32 %v627_v56, 0.0 }
 0x15c   :  { %v628_v57 = vpop.f32.mrf.mxu3 }
 0x15d   :  { %v629_v58 = vadd.f32 %v1056_v55, %v628_v57 }
 0x15f   :  { %v632_v60 = vmax.f32 %v629_v58, 0.0 }
 0x161   :  { %v633_v61 = vpack.c.bf16 %v632_v60, %v631_v59 }
 0x163   :  { %710 = vmatmul.bf16.vlgmr.msra.gmra.mxu2 %v633_v61 }
 0x1e6   :  { %v711_v62 = vpop.f32.mrf.mxu2 }
 0x1e7   :  { %v712_v1 = vadd.f32 %v1057_v63, %v711_v62 }
 0x1ee   :  { %v713_v0 = vpop.f32.mrf.mxu2 }
 0x1ef   :  { %v714_v2 = vadd.f32 %v1057_v63, %v713_v0 }
 0x1f1   :  { %v1053_v3 = vpack.c.bf16 %v714_v2, %v712_v1 }
 0x1f3   :  { %1054 = vst [vmem:[%s1354_s7] sm:$0xff] %v1053_v3  }

</bundles_post_ra>
